<compile_context>
chip_gen: v7x
topology: tpu7x:2x2x1
jax: 0.10.0
libtpu: 0.0.40
codegen_flags: <defaults>
</compile_context>

<pallas_src>
import jax
import jax.numpy as jnp
from jax.experimental import pallas as pl
from jax.experimental.pallas import tpu as pltpu

H1, H2 = 400, 300       # PyTorch hidden widths
H1P, H2P = 512, 384     # lane-aligned (multiple-of-128) padded widths


def _critic_kernel(xu_ref,
                   w14_ref, b14_ref,
                   w25_ref, b25_ref,
                   whead_ref, b36_ref,
                   out_ref):
    xu = xu_ref[...].astype(jnp.bfloat16)                       # (TB, D)

    # Layers 1 & 4 fused into a single MXU matmul over K = D:
    # cols [0:512) = Q1 branch, [512:1024) = Q2 branch.
    h = (jnp.dot(xu, w14_ref[...], preferred_element_type=jnp.float32)
         + b14_ref[...])
    h = jnp.maximum(h, 0.0).astype(jnp.bfloat16)                # (TB, 1024)
    h1 = h[:, :H1P]            # slice at a 512-lane (vreg-aligned) boundary
    h2 = h[:, H1P:]

    # Layers 2 & 5 (weights stacked along sublanes, biases along lanes).
    g1 = jnp.maximum(
        jnp.dot(h1, w25_ref[:H1P, :], preferred_element_type=jnp.float32)
        + b25_ref[:, :H2P], 0.0)                                # (TB, 384) f32
    g2 = jnp.maximum(
        jnp.dot(h2, w25_ref[H1P:, :], preferred_element_type=jnp.float32)
        + b25_ref[:, H2P:], 0.0)

    # Layers 3 & 6: N=2 head computed on the VPU/XLU (broadcast multiply +
    # lane reduction) in f32 instead of burning MXU K-passes on 2 output lanes.
    q1 = jnp.sum(g1 * whead_ref[0:1, :], axis=-1, keepdims=True) + b36_ref[:, 0:1]
    q2 = jnp.sum(g2 * whead_ref[1:2, :], axis=-1, keepdims=True) + b36_ref[:, 1:2]
    out_ref[:, 0:1] = q1
    out_ref[:, 1:2] = q2


def _round_up(n, m):
    return ((n + m - 1) // m) * m


def critic_forward(x, u, params, tb=None):
    """x: (B, state_dim), u: (B, action_dim). Returns (q1, q2), each (B, 1)."""
    B, S = x.shape
    A = u.shape[1]
    D = S + A

    # Mirrors torch.cat([x, u], 1); lets layers 1&4 be a single K=D matmul.
    xu = jnp.concatenate([x, u], axis=1)                        # (B, D) f32

    # Batch tile:
    #  * B <= 16: one full-batch block (block == full dim is always legal).
    #  * otherwise: <= 512 rows (v5e VMEM budget / dense-ish output buffer)
    #    and at least 2 grid steps so the "parallel" batch axis can be
    #    sharded across both v7x TensorCores.
    #  * `tb` override for large-batch training on v6e (e.g. 1024/2048).
    if tb is not None:
        TB = tb
    elif B <= 16:
        TB = B
    else:
        TB = min(512, _round_up(pl.cdiv(B, 2), 8))
    grid = (pl.cdiv(B, TB),)
    # NOTE: when B % TB != 0 the trailing block reads garbage rows; that is
    # benign because every row is independent and OOB rows are masked on store.

    def pinned(arr):
        nd = arr.ndim
        return pl.BlockSpec(arr.shape, lambda i, _nd=nd: (0,) * _nd)

    operands = (xu,
                params["w14"], params["b14"],
                params["w25"], params["b25"],
                params["whead"], params["b36"])

    in_specs = [pl.BlockSpec((TB, D), lambda i: (i, 0))] + \
               [pinned(p) for p in operands[1:]]

    weight_bytes = sum(int(p.size) * p.dtype.itemsize for p in operands[1:])
    cost = pl.CostEstimate(
        flops=2 * B * (D * 2 * H1 + 2 * H1 * H2 + 2 * H2),
        transcendentals=0,
        bytes_accessed=int(xu.size) * 4 + B * 2 * 4 + weight_bytes,
    )

    q = pl.pallas_call(
        _critic_kernel,
        out_shape=jax.ShapeDtypeStruct((B, 2), jnp.float32),
        grid=grid,
        in_specs=in_specs,
        out_specs=pl.BlockSpec((TB, 2), lambda i: (i, 0)),
        compiler_params=pltpu.CompilerParams(
            dimension_semantics=("parallel",)),
        cost_estimate=cost,
    )(*operands)
    return q[:, 0:1], q[:, 1:2]


def init_critic_params_raw(key, state_dim, action_dim):
    """PyTorch nn.Linear default init U(-1/sqrt(fan_in), 1/sqrt(fan_in));
    weights stored transposed vs PyTorch, i.e. (in_features, out_features)."""
    D = state_dim + action_dim
    dims = [(D, H1), (H1, H2), (H2, 1),    # Q1 branch
            (D, H1), (H1, H2), (H2, 1)]    # Q2 branch
    keys = jax.random.split(key, 2 * len(dims))
    raw = {}
    for i, (fi, fo) in enumerate(dims):
        bound = 1.0 / float(fi) ** 0.5
        raw[f"w{i + 1}"] = jax.random.uniform(
            keys[2 * i], (fi, fo), minval=-bound, maxval=bound, dtype=jnp.float32)
        raw[f"b{i + 1}"] = jax.random.uniform(
            keys[2 * i + 1], (fo,), minval=-bound, maxval=bound, dtype=jnp.float32)
    return raw


def pack_critic_params(raw, state_dim, action_dim, compute_dtype=jnp.bfloat16):
    """Pad hidden widths to 128 multiples, fuse/stack layers, cast MXU weights
    to bf16.  Head weights / all biases stay f32 (VPU path)."""
    D = state_dim + action_dim

    def padw(w, rows, cols):
        return jnp.pad(w, ((0, rows - w.shape[0]), (0, cols - w.shape[1])))

    def padb(b, cols):
        return jnp.pad(b, (0, cols - b.shape[0]))

    # Layers 1 & 4 fused along the output dim into one (D, 1024) weight.
    w14 = jnp.concatenate([padw(raw["w1"], D, H1P),
                           padw(raw["w4"], D, H1P)], axis=1)               # (D, 1024)
    b14 = jnp.concatenate([padb(raw["b1"], H1P),
                           padb(raw["b4"], H1P)])[None, :]                 # (1, 1024)

    # Layers 2 & 5 stacked along sublanes (rows) / lanes (bias).
    w25 = jnp.concatenate([padw(raw["w2"], H1P, H2P),
                           padw(raw["w5"], H1P, H2P)], axis=0)             # (1024, 384)
    b25 = jnp.concatenate([padb(raw["b2"], H2P),
                           padb(raw["b5"], H2P)])[None, :]                 # (1, 768)

    # Layers 3 & 6 as row vectors for the VPU head: row 0 = w3, row 1 = w6.
    whead = jnp.stack([padb(raw["w3"][:, 0], H2P),
                       padb(raw["w6"][:, 0], H2P)], axis=0)                # (2, 384) f32
    b36 = jnp.concatenate([raw["b3"], raw["b6"]])[None, :]                 # (1, 2)

    return dict(w14=w14.astype(compute_dtype),
                b14=b14,
                w25=w25.astype(compute_dtype),
                b25=b25,
                whead=whead,
                b36=b36)


def critic_forward_ref(x, u, raw):
    """Pure-JAX f32 reference with the exact PyTorch semantics."""
    xu = jnp.concatenate([x, u], axis=1)
    h1 = jnp.maximum(xu @ raw["w1"] + raw["b1"], 0.0)
    h1 = jnp.maximum(h1 @ raw["w2"] + raw["b2"], 0.0)
    q1 = h1 @ raw["w3"] + raw["b3"]
    h2 = jnp.maximum(xu @ raw["w4"] + raw["b4"], 0.0)
    h2 = jnp.maximum(h2 @ raw["w5"] + raw["b5"], 0.0)
    q2 = h2 @ raw["w6"] + raw["b6"]
    return q1, q2


if __name__ == "__main__":
    state_dim, action_dim = 32, 8

    key = jax.random.PRNGKey(0)
    k_params, k_x, k_u = jax.random.split(key, 3)

    raw = init_critic_params_raw(k_params, state_dim, action_dim)
    params = pack_critic_params(raw, state_dim, action_dim)

    fwd = jax.jit(critic_forward)

    # --- small batch (single grid step) ---
    x = jax.random.normal(k_x, (2, state_dim), dtype=jnp.float32)
    u = jax.random.normal(k_u, (2, action_dim), dtype=jnp.float32)
    q1, q2 = fwd(x, u, params)
    jax.block_until_ready((q1, q2))
    q1_ref, q2_ref = critic_forward_ref(x, u, raw)
    assert q1.shape == (2, 1) and q2.shape == (2, 1)
    # bf16 MXU inputs with f32 accumulation -> loosened tolerance vs f32 reference.
    assert jnp.allclose(q1, q1_ref, atol=3e-2, rtol=3e-2)
    assert jnp.allclose(q2, q2_ref, atol=3e-2, rtol=3e-2)

    # --- larger batch: exercises the 2-step grid (megacore path) and the
    # partial trailing block (B % TB != 0; OOB rows are dropped on store). ---
    xb = jax.random.normal(jax.random.PRNGKey(1), (100, state_dim), dtype=jnp.float32)
    ub = jax.random.normal(jax.random.PRNGKey(2), (100, action_dim), dtype=jnp.float32)
    q1b, q2b = fwd(xb, ub, params)
    jax.block_until_ready((q1b, q2b))
    q1b_ref, q2b_ref = critic_forward_ref(xb, ub, raw)
    assert q1b.shape == (100, 1) and q2b.shape == (100, 1)
    assert jnp.allclose(q1b, q1b_ref, atol=5e-2, rtol=5e-2)
    assert jnp.allclose(q2b, q2b_ref, atol=5e-2, rtol=5e-2)

    print("KERNEL_OK")
</pallas_src>

<mosaic_0001>
module attributes {stable_mosaic.version = 11 : i64} {
  func.func @_critic_kernel(%arg0: i32, %arg1: memref<2x40xf32, #tpu.memory_space<vmem>>, %arg2: memref<40x1024xbf16, #tpu.memory_space<vmem>>, %arg3: memref<1x1024xf32, #tpu.memory_space<vmem>>, %arg4: memref<1024x384xbf16, #tpu.memory_space<vmem>>, %arg5: memref<1x768xf32, #tpu.memory_space<vmem>>, %arg6: memref<2x384xf32, #tpu.memory_space<vmem>>, %arg7: memref<1x2xf32, #tpu.memory_space<vmem>>, %arg8: memref<2x2xf32, #tpu.memory_space<vmem>>) attributes {dimension_semantics = [#tpu.dimension_semantics<parallel>], iteration_bounds = array<i64: 1>, scalar_prefetch = 0 : i64, scratch_operands = 0 : i64, tpu.core_type = #tpu.core_type<tc>, window_params = [{transform_indices = @transform_0, window_bounds = array<i64: 2, 40>}, {pipeline_mode = #tpu.pipeline_mode<synchronous>, transform_indices = @transform_1, window_bounds = array<i64: 40, 1024>}, {pipeline_mode = #tpu.pipeline_mode<synchronous>, transform_indices = @transform_2, window_bounds = array<i64: 1, 1024>}, {pipeline_mode = #tpu.pipeline_mode<synchronous>, transform_indices = @transform_3, window_bounds = array<i64: 1024, 384>}, {pipeline_mode = #tpu.pipeline_mode<synchronous>, transform_indices = @transform_4, window_bounds = array<i64: 1, 768>}, {pipeline_mode = #tpu.pipeline_mode<synchronous>, transform_indices = @transform_5, window_bounds = array<i64: 2, 384>}, {pipeline_mode = #tpu.pipeline_mode<synchronous>, transform_indices = @transform_6, window_bounds = array<i64: 1, 2>}, {transform_indices = @transform_7, window_bounds = array<i64: 2, 2>}]} {
    %c0 = arith.constant 0 : index
    %c0_0 = arith.constant 0 : index
    %0 = vector.load %arg1[%c0, %c0_0] : memref<2x40xf32, #tpu.memory_space<vmem>>, vector<2x40xf32>
    %1 = arith.truncf %0 : vector<2x40xf32> to vector<2x40xbf16>
    %c0_1 = arith.constant 0 : index
    %c0_2 = arith.constant 0 : index
    %2 = vector.load %arg2[%c0_1, %c0_2] : memref<40x1024xbf16, #tpu.memory_space<vmem>>, vector<40x1024xbf16>
    %cst = arith.constant dense<0.000000e+00> : vector<2x1024xf32>
    %3 = tpu.matmul %1, %2, %cst {dimension_numbers = #tpu.dot_dimension_numbers<[1], [0], [0], [1], [0, 0, 1, 1], [], []>} : vector<2x40xbf16>, vector<40x1024xbf16>, vector<2x1024xf32> -> vector<2x1024xf32>
    %c0_3 = arith.constant 0 : index
    %c0_4 = arith.constant 0 : index
    %4 = vector.load %arg3[%c0_3, %c0_4] : memref<1x1024xf32, #tpu.memory_space<vmem>>, vector<1x1024xf32>
    %5 = vector.broadcast %4 : vector<1x1024xf32> to vector<2x1024xf32>
    %6 = arith.addf %3, %5 : vector<2x1024xf32>
    %cst_5 = arith.constant 0.000000e+00 : f32
    %7 = vector.broadcast %cst_5 : f32 to vector<2x1024xf32>
    %8 = arith.maximumf %6, %7 : vector<2x1024xf32>
    %9 = arith.truncf %8 : vector<2x1024xf32> to vector<2x1024xbf16>
    %10 = vector.extract_strided_slice %9 {offsets = [0, 0], sizes = [2, 512], strides = [1, 1]} : vector<2x1024xbf16> to vector<2x512xbf16>
    %11 = vector.extract_strided_slice %9 {offsets = [0, 512], sizes = [2, 512], strides = [1, 1]} : vector<2x1024xbf16> to vector<2x512xbf16>
    %c0_6 = arith.constant 0 : index
    %c0_7 = arith.constant 0 : index
    %12 = vector.load %arg4[%c0_6, %c0_7] : memref<1024x384xbf16, #tpu.memory_space<vmem>>, vector<512x384xbf16>
    %cst_8 = arith.constant dense<0.000000e+00> : vector<2x384xf32>
    %13 = tpu.matmul %10, %12, %cst_8 {dimension_numbers = #tpu.dot_dimension_numbers<[1], [0], [0], [1], [0, 0, 1, 1], [], []>} : vector<2x512xbf16>, vector<512x384xbf16>, vector<2x384xf32> -> vector<2x384xf32>
    %c0_9 = arith.constant 0 : index
    %c0_10 = arith.constant 0 : index
    %14 = vector.load %arg5[%c0_9, %c0_10] : memref<1x768xf32, #tpu.memory_space<vmem>>, vector<1x384xf32>
    %15 = vector.broadcast %14 : vector<1x384xf32> to vector<2x384xf32>
    %16 = arith.addf %13, %15 : vector<2x384xf32>
    %cst_11 = arith.constant 0.000000e+00 : f32
    %17 = vector.broadcast %cst_11 : f32 to vector<2x384xf32>
    %18 = arith.maximumf %16, %17 : vector<2x384xf32>
    %c512 = arith.constant 512 : index
    %c0_12 = arith.constant 0 : index
    %19 = vector.load %arg4[%c512, %c0_12] : memref<1024x384xbf16, #tpu.memory_space<vmem>>, vector<512x384xbf16>
    %cst_13 = arith.constant dense<0.000000e+00> : vector<2x384xf32>
    %20 = tpu.matmul %11, %19, %cst_13 {dimension_numbers = #tpu.dot_dimension_numbers<[1], [0], [0], [1], [0, 0, 1, 1], [], []>} : vector<2x512xbf16>, vector<512x384xbf16>, vector<2x384xf32> -> vector<2x384xf32>
    %c0_14 = arith.constant 0 : index
    %c384 = arith.constant 384 : index
    %21 = vector.load %arg5[%c0_14, %c384] : memref<1x768xf32, #tpu.memory_space<vmem>>, vector<1x384xf32>
    %22 = vector.broadcast %21 : vector<1x384xf32> to vector<2x384xf32>
    %23 = arith.addf %20, %22 : vector<2x384xf32>
    %cst_15 = arith.constant 0.000000e+00 : f32
    %24 = vector.broadcast %cst_15 : f32 to vector<2x384xf32>
    %25 = arith.maximumf %23, %24 : vector<2x384xf32>
    %c0_16 = arith.constant 0 : index
    %c0_17 = arith.constant 0 : index
    %26 = vector.load %arg6[%c0_16, %c0_17] : memref<2x384xf32, #tpu.memory_space<vmem>>, vector<1x384xf32>
    %27 = vector.broadcast %26 : vector<1x384xf32> to vector<2x384xf32>
    %28 = arith.mulf %18, %27 : vector<2x384xf32>
    %cst_18 = arith.constant dense<0.000000e+00> : vector<2xf32>
    %29 = vector.multi_reduction <add>, %28, %cst_18 [1] : vector<2x384xf32> to vector<2xf32>
    %30 = vector.shape_cast %29 : vector<2xf32> to vector<2x1xf32>
    %c0_19 = arith.constant 0 : index
    %c0_20 = arith.constant 0 : index
    %31 = vector.load %arg7[%c0_19, %c0_20] : memref<1x2xf32, #tpu.memory_space<vmem>>, vector<1x1xf32>
    %32 = vector.broadcast %31 : vector<1x1xf32> to vector<2x1xf32>
    %33 = arith.addf %30, %32 : vector<2x1xf32>
    %c1 = arith.constant 1 : index
    %c0_21 = arith.constant 0 : index
    %34 = vector.load %arg6[%c1, %c0_21] : memref<2x384xf32, #tpu.memory_space<vmem>>, vector<1x384xf32>
    %35 = vector.broadcast %34 : vector<1x384xf32> to vector<2x384xf32>
    %36 = arith.mulf %25, %35 : vector<2x384xf32>
    %cst_22 = arith.constant dense<0.000000e+00> : vector<2xf32>
    %37 = vector.multi_reduction <add>, %36, %cst_22 [1] : vector<2x384xf32> to vector<2xf32>
    %38 = vector.shape_cast %37 : vector<2xf32> to vector<2x1xf32>
    %c0_23 = arith.constant 0 : index
    %c1_24 = arith.constant 1 : index
    %39 = vector.load %arg7[%c0_23, %c1_24] : memref<1x2xf32, #tpu.memory_space<vmem>>, vector<1x1xf32>
    %40 = vector.broadcast %39 : vector<1x1xf32> to vector<2x1xf32>
    %41 = arith.addf %38, %40 : vector<2x1xf32>
    %c0_25 = arith.constant 0 : index
    %c0_26 = arith.constant 0 : index
    %42 = vector.load %arg8[%c0_25, %c0_26] : memref<2x2xf32, #tpu.memory_space<vmem>>, vector<2x1xf32>
    tpu.vector_store %arg8[%c0_25, %c0_26], %33 {strides = array<i32>} : memref<2x2xf32, #tpu.memory_space<vmem>>, vector<2x1xf32>,
    %c0_27 = arith.constant 0 : index
    %c1_28 = arith.constant 1 : index
    %43 = vector.load %arg8[%c0_27, %c1_28] : memref<2x2xf32, #tpu.memory_space<vmem>>, vector<2x1xf32>
    tpu.vector_store %arg8[%c0_27, %c1_28], %41 {strides = array<i32>} : memref<2x2xf32, #tpu.memory_space<vmem>>, vector<2x1xf32>,
    return
  }
  func.func @transform_0(%arg0: i32) -> (i32, i32) {
    %c0_i32 = arith.constant 0 : i32
    %c0_i32_0 = arith.constant 0 : i32
    return %arg0, %c0_i32 : i32, i32
  }
  func.func @transform_1(%arg0: i32) -> (i32, i32) {
    %c0_i32 = arith.constant 0 : i32
    %c0_i32_0 = arith.constant 0 : i32
    %c0_i32_1 = arith.constant 0 : i32
    return %c0_i32, %c0_i32_0 : i32, i32
  }
  func.func @transform_2(%arg0: i32) -> (i32, i32) {
    %c0_i32 = arith.constant 0 : i32
    %c0_i32_0 = arith.constant 0 : i32
    %c0_i32_1 = arith.constant 0 : i32
    return %c0_i32, %c0_i32_0 : i32, i32
  }
  func.func @transform_3(%arg0: i32) -> (i32, i32) {
    %c0_i32 = arith.constant 0 : i32
    %c0_i32_0 = arith.constant 0 : i32
    %c0_i32_1 = arith.constant 0 : i32
    return %c0_i32, %c0_i32_0 : i32, i32
  }
  func.func @transform_4(%arg0: i32) -> (i32, i32) {
    %c0_i32 = arith.constant 0 : i32
    %c0_i32_0 = arith.constant 0 : i32
    %c0_i32_1 = arith.constant 0 : i32
    return %c0_i32, %c0_i32_0 : i32, i32
  }
  func.func @transform_5(%arg0: i32) -> (i32, i32) {
    %c0_i32 = arith.constant 0 : i32
    %c0_i32_0 = arith.constant 0 : i32
    %c0_i32_1 = arith.constant 0 : i32
    return %c0_i32, %c0_i32_0 : i32, i32
  }
  func.func @transform_6(%arg0: i32) -> (i32, i32) {
    %c0_i32 = arith.constant 0 : i32
    %c0_i32_0 = arith.constant 0 : i32
    %c0_i32_1 = arith.constant 0 : i32
    return %c0_i32, %c0_i32_0 : i32, i32
  }
  func.func @transform_7(%arg0: i32) -> (i32, i32) {
    %c0_i32 = arith.constant 0 : i32
    %c0_i32_0 = arith.constant 0 : i32
    return %arg0, %c0_i32 : i32, i32
  }
}

</mosaic_0001>

<bundles_post_ra>
// kernel: critic_forward.1
= control target key start
LH: loop header
LB: loop body
LE: loop exit
PB: predicated region body
PF: predicated region fallthrough
CT: control target
= control target key end

     0   :  { %12 = vsyncpa [#allocation3], 0  ;;  %s2973_s0 = inlined_call_operand.vmem [shape: f32[2,40], index: 0, kind: input, shape index: {}]   ;;  %s2974_s1 = inlined_call_operand.hbm [shape: bf16[40,1024], index: 1, kind: input, shape index: {}]   ;;  %s2975_s2 = inlined_call_operand.vmem [shape: f32[1,1024], index: 2, kind: input, shape index: {}]   ;;  %s2976_s3 = inlined_call_operand.hbm [shape: bf16[1024,384], index: 3, kind: input, shape index: {}]   ;;  %s2977_s4 = inlined_call_operand.vmem [shape: f32[1,768], index: 4, kind: input, shape index: {}]   ;;  %s2978_s5 = inlined_call_operand.vmem [shape: f32[2,384], index: 5, kind: input, shape index: {}]   ;;  %s2979_s6 = inlined_call_operand.vmem [shape: f32[1,2], index: 6, kind: input, shape index: {}]   ;;  %s2980_s7 = inlined_call_operand.vmem [shape: f32[2,2], index: 7, kind: output, shape index: {}]  }
   0x1   :  { %13 = vsyncpa [#allocation5], 0  ;;  %s2792_s24 = smov [#allocation2]   ;;  %s2744_s28 = scalar_lea.hbm %s2974_s1, 2560 }
   0x2   :  { %s21_s25 = sshll.u32 %s2792_s24, 4  ;;  %p2745_p0 = scmp.ne.s32.totalorder %s2974_s1, %s2744_s28  ;;  %s22_s25 = int_to_ptr.vmem [resolvable:$true] %s21_s25 }
   0x3   :  { %p2748_p1 = scmp.lt.u32.totalorder %s2744_s28, %s2974_s1 }
   0x5   :  { %p2750_p2 = pnand %p2748_p1, %p2745_p0 }
   0x7   :  { %2753 = shalt.err (!%p2750_p2)
}
   0x8   :  { %s2754_s10 = scalar_lea.vmem %s22_s25, 2560  ;;  %p2759_p4 = scmp.lt.s32.totalorder %s22_s25, %s22_s25 }
   0x9   :  { %p2755_p3 = scmp.ne.s32.totalorder %s22_s25, %s2754_s10  ;;  %p2760_p5 = scmp.lt.s32.totalorder %s2754_s10, %s2754_s10 }
   0xb   :  { %p2761_p6 = por %p2760_p5, %p2759_p4 }
   0xd   :  { %p2762_p7 = pnand %p2761_p6, %p2755_p3 }
   0xf   :  { %2765 = shalt.err (!%p2762_p7)
}
  0x10   :  { %s2793_s11 = smov 512   ;;  %s2794_s12 = smov 32  }
  0x11   :  { %27 = dma.hbm_to_vmem [thread:$0]  %s2974_s1, 2560, %s22_s25, [#allocation3], %s2793_s11, %s2793_s11, %s2794_s12  }
  0x12   :  { %s2795_s15 = smov [#allocation4]   ;;  %s2766_s19 = scalar_lea.hbm %s2976_s3, 24576 }
  0x13   :  { %s35_s16 = sshll.u32 %s2795_s15, 4  ;;  %p2767_p8 = scmp.ne.s32.totalorder %s2976_s3, %s2766_s19  ;;  %s36_s16 = int_to_ptr.vmem [resolvable:$true] %s35_s16 }
  0x14   :  { %p2770_p9 = scmp.lt.u32.totalorder %s2766_s19, %s2976_s3 }
  0x16   :  { %p2772_p10 = pnand %p2770_p9, %p2767_p8 }
  0x18   :  { %2775 = shalt.err (!%p2772_p10)
}
  0x19   :  { %s2776_s24 = scalar_lea.vmem %s36_s16, 24576  ;;  %p2781_p12 = scmp.lt.s32.totalorder %s36_s16, %s36_s16 }
  0x1a   :  { %p2777_p11 = scmp.ne.s32.totalorder %s36_s16, %s2776_s24  ;;  %p2782_p13 = scmp.lt.s32.totalorder %s2776_s24, %s2776_s24 }
  0x1c   :  { %p2783_p0 = por %p2782_p13, %p2781_p12 }
  0x1e   :  { %p2784_p1 = pnand %p2783_p0, %p2777_p11 }
  0x20   :  { %2787 = shalt.err (!%p2784_p1)
}
  0x21   :  { %s2796_s1 = smov 192   ;;  %s2797_s25 = smov 12  }
  0x22   :  { %41 = dma.hbm_to_vmem [thread:$0]  %s2976_s3, 24576, %s36_s16, [#allocation5], %s2796_s1, %s2796_s1, %s2797_s25  }
  0x23   :  { %2788 = dma.done.wait [#allocation3], 2560  }
  0x24   :  { %2789 = vsyncadd [#allocation3], 4294964736 }
  0x25   :  { %2790 = dma.done.wait [#allocation5], 24576  }
  0x26   :  { %2791 = vsyncadd [#allocation5], 4294942720  ;;  %v2798_v0 = vmov 0   ;;  %v57_v1 = vld [vmem:[#allocation2] sm:$0xff]  ;;  %v58_v9 = vld [vmem:[#allocation2 + $0x8] sm:$0xff]  ;;  %vm223_vm0 = vcmask 1043456  }
  0x27   :  { %280 = vmatprep.mubr.bf16.mxu0 %v2798_v0  ;;  %321 = vmatprep.mubr.bf16.mxu1 %v2798_v0  ;;  %v61_v2 = vld [vmem:[#allocation2 + $0x20] sm:$0xff]  ;;  %v62_v10 = vld [vmem:[#allocation2 + $0x28] sm:$0xff]  ;;  %v59_v22 = vld [vmem:[#allocation2 + $0x10] sm:$0xff]  ;;  %vm219_vm1 = vcmask 326656   ;;  %vm2092_vm2 = vcmask 1041408   ;;  %vm2137_vm3 = vcmask 1024  }
  0x28   :  { %v65_v3 = vld [vmem:[#allocation2 + $0x40] sm:$0xff]  ;;  %v2148_v4 = vcombine.high %v57_v1, %v61_v2  ;;  %v2147_v5 = vcombine.low %v57_v1, %v61_v2  ;;  %v66_v11 = vld [vmem:[#allocation2 + $0x48] sm:$0xff]  ;;  %v2150_v12 = vcombine.high %v58_v9, %v62_v10  ;;  %v2149_v13 = vcombine.low %v58_v9, %v62_v10  ;;  %v63_v23 = vld [vmem:[#allocation2 + $0x30] sm:$0xff] }
  0x29   :  { %v69_v6 = vld [vmem:[#allocation2 + $0x60] sm:$0xff]  ;;  %v70_v14 = vld [vmem:[#allocation2 + $0x68] sm:$0xff]  ;;  %v60_v26 = vld [vmem:[#allocation2 + $0x18] sm:$0xff]  ;;  %v2152_v29 = vcombine.high %v59_v22, %v63_v23  ;;  %v2151_v36 = vcombine.low %v59_v22, %v63_v23  ;;  %vm2139_vm4 = vcmask 9224  }
  0x2a   :  { %v73_v7 = vld [vmem:[#allocation2 + $0x80] sm:$0xff]  ;;  %v2156_v8 = vcombine.high %v65_v3, %v69_v6  ;;  %248 = vmatprep.subr.bf16.mxu0 %v2148_v4  ;;  %v2155_v15 = vcombine.low %v65_v3, %v69_v6  ;;  %v2158_v16 = vcombine.high %v66_v11, %v70_v14  ;;  %v74_v17 = vld [vmem:[#allocation2 + $0x88] sm:$0xff]  ;;  %289 = vmatprep.subr.bf16.mxu1 %v2150_v12  ;;  %v64_v27 = vld [vmem:[#allocation2 + $0x38] sm:$0xff] }
  0x2b   :  { %249 = vmatpush1.bf16.msra.mxu0 %v2147_v5  ;;  %v2164_v18 = vcombine.high %v73_v7, %v73_v7  ;;  %v2163_v19 = vcombine.low %v73_v7, %v73_v7  ;;  %v55_v20 = vld [vmem:[%s2973_s0] sm:$0x3]  ;;  %290 = vmatpush1.bf16.msra.mxu1 %v2149_v13  ;;  %v2157_v21 = vcombine.low %v66_v11, %v70_v14  ;;  %v67_v30 = vld [vmem:[#allocation2 + $0x50] sm:$0xff]  ;;  %v68_v35 = vld [vmem:[#allocation2 + $0x58] sm:$0xff] }
  0x2c   :  { %250 = vmatprep.subr.bf16.mxu0 %v2156_v8  ;;  %291 = vmatprep.subr.bf16.mxu1 %v2158_v16  ;;  %v2166_v24 = vcombine.high %v74_v17, %v74_v17  ;;  %v2165_v25 = vcombine.low %v74_v17, %v74_v17  ;;  %v71_v31 = vld [vmem:[#allocation2 + $0x70] sm:$0xff]  ;;  %v56_v32 = vpack.c.bf16 %v55_v20, %v55_v20  ;;  %v72_v37 = vld [vmem:[#allocation2 + $0x78] sm:$0xff]  ;;  %v2488_v53 = vld [vmem:[#allocation4] ss:$12 sps:$4 sm:$0xff]  }
  0x2d   :  { %v225_v28 = vsel %vm223_vm0, %v2163_v19, 0  ;;  %v2154_v34 = vcombine.high %v60_v26, %v64_v27  ;;  %v2160_v38 = vcombine.high %v67_v30, %v71_v31  ;;  %v75_v39 = vld [vmem:[#allocation2 + $0x90] sm:$0xff]  ;;  %v2153_v40 = vcombine.low %v60_v26, %v64_v27  ;;  %v76_v42 = vld [vmem:[#allocation2 + $0x98] sm:$0xff]  ;;  %v2520_v56 = vld [vmem:[#allocation4 + $0xe0] ss:$12 sps:$4 sm:$0xff]  }
  0x2e   :  { %v231_v33 = vsel %vm223_vm0, %v2165_v25, 0  ;;  %v2162_v41 = vcombine.high %v68_v35, %v72_v37  ;;  %v2159_v43 = vcombine.low %v67_v30, %v71_v31  ;;  %v2168_v44 = vcombine.high %v75_v39, %v75_v39  ;;  %v2490_v50 = vld [vmem:[#allocation4 + $0x4] ss:$12 sps:$4 sm:$0xff]   ;;  %v2515_v52 = vld [vmem:[#allocation4 + $0xc8] ss:$12 sps:$4 sm:$0xff]  }
  0x2f   :  { %251 = vmatpush1.bf16.msra.mxu0 %v2155_v15  ;;  %292 = vmatpush1.bf16.msra.mxu1 %v2157_v21  ;;  %v2167_v45 = vcombine.low %v75_v39, %v75_v39  ;;  %v2161_v46 = vcombine.low %v68_v35, %v72_v37  ;;  %v2169_v47 = vcombine.low %v76_v42, %v76_v42  ;;  %v2493_v54 = vld [vmem:[#allocation4 + $0x1c] ss:$12 sps:$4 sm:$0xff]   ;;  %v2491_v57 = vld [vmem:[#allocation4 + $0x18] ss:$12 sps:$4 sm:$0xff]   ;;  %v2496_v58 = vld [vmem:[#allocation4 + $0x34] ss:$12 sps:$4 sm:$0xff]   ;;  %v79_v37 = vlaneseq }
  0x30   :  { %2171 = vmatprep.subr.msk.bf16.mxu0 %vm223_vm0, %v2164_v18  ;;  %2173 = vmatprep.subr.msk.bf16.mxu1 %vm223_vm0, %v2166_v24  ;;  %v2170_v48 = vcombine.high %v76_v42, %v76_v42  ;;  %v2516_v55 = vld [vmem:[#allocation4 + $0x8] ss:$12 sps:$4 sm:$0xff]   ;;  %v2521_v59 = vld [vmem:[#allocation4 + $0x20] ss:$12 sps:$4 sm:$0xff]   ;;  %v2525_v60 = vld [vmem:[#allocation4 + $0xf8] ss:$12 sps:$4 sm:$0xff]  }
  0x31   :  { %v237_v49 = vsel %vm223_vm0, %v2167_v45, 0  ;;  %v243_v51 = vsel %vm223_vm0, %v2169_v47, 0  ;;  %v2494_v61 = vld [vmem:[#allocation4 + $0x30] ss:$12 sps:$4 sm:$0xff]   ;;  %v2499_v62 = vld [vmem:[#allocation4 + $0x4c] ss:$12 sps:$4 sm:$0xff]  }
  0x32   :  { %v2526_v63 = vld [vmem:[#allocation4 + $0x38] ss:$12 sps:$4 sm:$0xff]   ;;  %v2530_v1 = vld [vmem:[#allocation4 + $0x110] ss:$12 sps:$4 sm:$0xff]   ;;  %v2535_v4 = vld [vmem:[#allocation4 + $0x128] ss:$12 sps:$4 sm:$0xff]  }
  0x33   :  { %253 = vmatpush1.bf16.msra.mxu0 %v225_v28  ;;  %294 = vmatpush1.bf16.msra.mxu1 %v231_v33  ;;  %v2502_v2 = vld [vmem:[#allocation4 + $0x64] ss:$12 sps:$4 sm:$0xff]   ;;  %v2500_v5 = vld [vmem:[#allocation4 + $0x60] ss:$12 sps:$4 sm:$0xff]   ;;  %v2505_v6 = vld [vmem:[#allocation4 + $0x7c] ss:$12 sps:$4 sm:$0xff]  }
  0x34   :  { %330 = vmatprep.subr.bf16.mxu0 %v2152_v29  ;;  %371 = vmatprep.subr.bf16.mxu1 %v2154_v34  ;;  %v2531_v3 = vld [vmem:[#allocation4 + $0x50] ss:$12 sps:$4 sm:$0xff]   ;;  %v2536_v7 = vld [vmem:[#allocation4 + $0x68] ss:$12 sps:$4 sm:$0xff]   ;;  %v2540_v8 = vld [vmem:[#allocation4 + $0x140] ss:$12 sps:$4 sm:$0xff]  }
  0x35   :  { %v2503_v9 = vld [vmem:[#allocation4 + $0x78] ss:$12 sps:$4 sm:$0xff]   ;;  %v2508_v10 = vld [vmem:[#allocation4 + $0x94] ss:$12 sps:$4 sm:$0xff]   ;;  %v2506_v12 = vld [vmem:[#allocation4 + $0x90] ss:$12 sps:$4 sm:$0xff]  }
  0x36   :  { %2172 = vmatmul.mubr.msk.bf16.vlgmr.msra.gmra.mrb[0].mxu0 %vm219_vm1, %v56_v32  ;;  %2174 = vmatmul.mubr.msk.bf16.vlgmr.msra.gmra.mrb[0].mxu1 %vm219_vm1, %v56_v32  ;;  %v2541_v11 = vld [vmem:[#allocation4 + $0x80] ss:$12 sps:$4 sm:$0xff]   ;;  %v2509_v14 = vld [vmem:[#allocation4 + $0xa8] ss:$12 sps:$4 sm:$0xff]   ;;  %v2514_v15 = vld [vmem:[#allocation4 + $0xc4] ss:$12 sps:$4 sm:$0xff]  }
  0x37   :  { %331 = vmatpush1.bf16.msra.mxu0 %v2151_v36  ;;  %362 = vmatprep.mubr.bf16.mxu0 %v2798_v0  ;;  %v2511_v13 = vld [vmem:[#allocation4 + $0xac] ss:$12 sps:$4 sm:$0xff]   ;;  %v2519_v17 = vld [vmem:[#allocation4 + $0xdc] ss:$12 sps:$4 sm:$0xff]   ;;  %v2524_v19 = vld [vmem:[#allocation4 + $0xf4] ss:$12 sps:$4 sm:$0xff]  }
  0x38   :  { %332 = vmatprep.subr.bf16.mxu0 %v2160_v38  ;;  %372 = vmatpush1.bf16.msra.mxu1 %v2153_v40  ;;  %v2512_v16 = vld [vmem:[#allocation4 + $0xc0] ss:$12 sps:$4 sm:$0xff]   ;;  %v2517_v18 = vld [vmem:[#allocation4 + $0xd8] ss:$12 sps:$4 sm:$0xff]   ;;  %v2522_v20 = vld [vmem:[#allocation4 + $0xf0] ss:$12 sps:$4 sm:$0xff]  }
  0x39   :  { %403 = vmatprep.mubr.bf16.mxu1 %v2798_v0  ;;  %373 = vmatprep.subr.bf16.mxu1 %v2162_v41  ;;  %v2497_v0 = vld [vmem:[#allocation4 + $0x48] ss:$12 sps:$4 sm:$0xff]   ;;  %v2529_v21 = vld [vmem:[#allocation4 + $0x10c] ss:$12 sps:$4 sm:$0xff]   ;;  %v2534_v23 = vld [vmem:[#allocation4 + $0x124] ss:$12 sps:$4 sm:$0xff]  }
  0x3a   :  { %v2527_v22 = vld [vmem:[#allocation4 + $0x108] ss:$12 sps:$4 sm:$0xff]   ;;  %v2532_v24 = vld [vmem:[#allocation4 + $0x120] ss:$12 sps:$4 sm:$0xff]   ;;  %v2537_v26 = vld [vmem:[#allocation4 + $0x138] ss:$12 sps:$4 sm:$0xff]  }
  0x3b   :  { %333 = vmatpush1.bf16.msra.mxu0 %v2159_v43  ;;  %v2539_v25 = vld [vmem:[#allocation4 + $0x13c] ss:$12 sps:$4 sm:$0xff]   ;;  %v2544_v27 = vld [vmem:[#allocation4 + $0x154] ss:$12 sps:$4 sm:$0xff]   ;;  %v2545_v28 = vld [vmem:[#allocation4 + $0x158] ss:$12 sps:$4 sm:$0xff]  }
  0x3c   :  { %2175 = vmatprep.subr.msk.bf16.mxu0 %vm223_vm0, %v2168_v44  ;;  %374 = vmatpush1.bf16.msra.mxu1 %v2161_v46  ;;  %v2542_v29 = vld [vmem:[#allocation4 + $0x150] ss:$12 sps:$4 sm:$0xff]   ;;  %v2546_v30 = vld [vmem:[#allocation4 + $0x98] ss:$12 sps:$4 sm:$0xff]   ;;  %v2547_v33 = vld [vmem:[#allocation4 + $0x168] ss:$12 sps:$4 sm:$0xff]  }
  0x3d   :  { %2177 = vmatprep.subr.msk.bf16.mxu1 %vm223_vm0, %v2170_v48  ;;  %v2549_v31 = vld [vmem:[#allocation4 + $0x16c] ss:$12 sps:$4 sm:$0xff]   ;;  %v2551_v34 = vld [vmem:[#allocation4 + $0xb0] ss:$12 sps:$4 sm:$0xff]   ;;  %v2555_v36 = vld [vmem:[#allocation4 + $0x248] ss:$12 sps:$4 sm:$0xff]  }
  0x3e   :  { %v2554_v35 = vld [vmem:[#allocation4 + $0x184] ss:$12 sps:$4 sm:$0xff]   ;;  %v2882_v38 = vshrl.u32 %v79_v37, 7 }
  0x3f   :  { %335 = vmatpush1.bf16.msra.mxu0 %v237_v49  ;;  %v2890_v40 = vld [vmem:[%s2975_s2] sm:$0xff] }
  0x40   :  { %1085 = vmatprep.subr.bf16.mxu0 %v2490_v50  ;;  %376 = vmatpush1.bf16.msra.mxu1 %v243_v51  ;;  %v2885_v39 = vsub.s32 0, %v2882_v38  ;;  %v2893_v41 = vsub.s32 1, %v2882_v38  ;;  %v93_v42 = vsub.s32 3, %v2882_v38  ;;  %v2586_v37 = vld [vmem:[#allocation4 + $0x218] ss:$12 sps:$4 sm:$0xff]  }
  0x41   :  { %2373 = vmatprep.subr.bf16.mxu1 %v2515_v52 }
  0x42   :  { %2176 = vmatmul.mubr.msk.bf16.vlgmr.msra.gmra.mrb[4].mxu0 %vm219_vm1, %v56_v32  ;;  %v82_v43 = vrot.slane %v2890_v40, %v2885_v39  ;;  %v86_v44 = vrot.slane %v2890_v40, %v2893_v41  ;;  %v94_v46 = vrot.slane %v2890_v40, %v93_v42  ;;  %v2589_v42 = vld [vmem:[#allocation4 + $0x22c] ss:$12 sps:$4 sm:$0xff]  }
  0x43   :  { %1086 = vmatpush1.bf16.msra.mxu0 %v2488_v53  ;;  %2178 = vmatmul.mubr.msk.bf16.vlgmr.msra.gmra.mrb[4].mxu1 %vm219_vm1, %v56_v32  ;;  %v2550_v32 = vld [vmem:[#allocation4 + $0x170] ss:$12 sps:$4 sm:$0xff]  }
  0x44   :  { %1087 = vmatprep.subr.bf16.mxu0 %v2493_v54  ;;  %2374 = vmatpush3.bf16.msra.mxu1 %v2516_v55 }
  0x45   :  { %2375 = vmatprep.subr.bf16.mxu1 %v2520_v56 }
  0x47   :  { %1088 = vmatpush1.bf16.msra.mxu0 %v2491_v57 }
  0x48   :  { %1089 = vmatprep.subr.bf16.mxu0 %v2496_v58  ;;  %2376 = vmatpush3.bf16.msra.mxu1 %v2521_v59 }
  0x49   :  { %2377 = vmatprep.subr.bf16.mxu1 %v2525_v60  ;;  %v2552_v60 = vld [vmem:[#allocation4 + $0x180] ss:$12 sps:$4 sm:$0xff]  }
  0x4b   :  { %1090 = vmatpush1.bf16.msra.mxu0 %v2494_v61  ;;  %v2556_v61 = vld [vmem:[#allocation4 + $0x188] ss:$12 sps:$4 sm:$0xff]  }
  0x4c   :  { %1091 = vmatprep.subr.bf16.mxu0 %v2499_v62  ;;  %2378 = vmatpush3.bf16.msra.mxu1 %v2526_v63 }
  0x4d   :  { %2379 = vmatprep.subr.bf16.mxu1 %v2530_v1  ;;  %v2560_v1 = vld [vmem:[#allocation4 + $0x260] ss:$12 sps:$4 sm:$0xff]  }
  0x4f   :  { %1092 = vmatpush1.bf16.msra.mxu0 %v2497_v0  ;;  %v2559_v0 = vld [vmem:[#allocation4 + $0x19c] ss:$12 sps:$4 sm:$0xff]  }
  0x50   :  { %1093 = vmatprep.subr.bf16.mxu0 %v2502_v2  ;;  %2380 = vmatpush3.bf16.msra.mxu1 %v2531_v3  ;;  %v2557_v3 = vld [vmem:[#allocation4 + $0x198] ss:$12 sps:$4 sm:$0xff]  }
  0x51   :  { %2381 = vmatprep.subr.bf16.mxu1 %v2535_v4  ;;  %v2561_v4 = vld [vmem:[#allocation4 + $0x1a0] ss:$12 sps:$4 sm:$0xff]  }
  0x53   :  { %1094 = vmatpush1.bf16.msra.mxu0 %v2500_v5  ;;  %v2564_v5 = vld [vmem:[#allocation4 + $0x1b4] ss:$12 sps:$4 sm:$0xff]  }
  0x54   :  { %1095 = vmatprep.subr.bf16.mxu0 %v2505_v6  ;;  %2382 = vmatpush3.bf16.msra.mxu1 %v2536_v7  ;;  %v2565_v6 = vld [vmem:[#allocation4 + $0x278] ss:$12 sps:$4 sm:$0xff]  }
  0x55   :  { %2383 = vmatprep.subr.bf16.mxu1 %v2540_v8 }
  0x57   :  { %1096 = vmatpush1.bf16.msra.mxu0 %v2503_v9  ;;  %v2562_v9 = vld [vmem:[#allocation4 + $0x1b0] ss:$12 sps:$4 sm:$0xff]  }
  0x58   :  { %1097 = vmatprep.subr.bf16.mxu0 %v2508_v10  ;;  %2384 = vmatpush3.bf16.msra.mxu1 %v2541_v11  ;;  %v2566_v10 = vld [vmem:[#allocation4 + $0x1b8] ss:$12 sps:$4 sm:$0xff]  }
  0x59   :  { %2385 = vmatprep.subr.bf16.mxu1 %v2545_v28  ;;  %v101_v28 = vsub.s32 5, %v2882_v38 }
  0x5b   :  { %1098 = vmatpush1.bf16.msra.mxu0 %v2506_v12 }
  0x5c   :  { %1099 = vmatprep.subr.bf16.mxu0 %v2511_v13  ;;  %2386 = vmatpush3.bf16.msra.mxu1 %v2546_v30  ;;  %v2569_v13 = vld [vmem:[#allocation4 + $0x1cc] ss:$12 sps:$4 sm:$0xff]  }
  0x5d   :  { %2387 = vmatprep.subr.bf16.mxu1 %v2550_v32  ;;  %v2577_v30 = vld [vmem:[#allocation4 + $0x1f8] ss:$12 sps:$4 sm:$0xff]   ;;  %v2584_v32 = vld [vmem:[#allocation4 + $0x214] ss:$12 sps:$4 sm:$0xff]  }
  0x5f   :  { %1100 = vmatpush1.bf16.msra.mxu0 %v2509_v14  ;;  %v2570_v14 = vld [vmem:[#allocation4 + $0x290] ss:$12 sps:$4 sm:$0xff]  }
  0x60   :  { %1101 = vmatprep.subr.bf16.mxu0 %v2514_v15  ;;  %2388 = vmatpush3.bf16.msra.mxu1 %v2551_v34  ;;  %v102_v34 = vrot.slane %v2890_v40, %v101_v28  ;;  %v2648_v28 = vld [vmem:[#allocation4 + $0x3e0] ss:$12 sps:$4 sm:$0xff]  }
  0x61   :  { %2395 = vmatprep.subr.bf16.mxu1 %v2555_v36  ;;  %v2582_v36 = vld [vmem:[#allocation4 + $0x210] ss:$12 sps:$4 sm:$0xff]  }
  0x63   :  { %1102 = vmatpush1.bf16.msra.mxu0 %v2512_v16 }
  0x64   :  { %1103 = vmatprep.subr.bf16.mxu0 %v2519_v17 }
  0x67   :  { %1104 = vmatpush1.bf16.msra.mxu0 %v2517_v18 }
  0x68   :  { %1105 = vmatprep.subr.bf16.mxu0 %v2524_v19  ;;  %v2567_v19 = vld [vmem:[#allocation4 + $0x1c8] ss:$12 sps:$4 sm:$0xff]  }
  0x6b   :  { %1106 = vmatpush1.bf16.msra.mxu0 %v2522_v20  ;;  %v2571_v20 = vld [vmem:[#allocation4 + $0x1d0] ss:$12 sps:$4 sm:$0xff]  }
  0x6c   :  { %1107 = vmatprep.subr.bf16.mxu0 %v2529_v21  ;;  %v2574_v21 = vld [vmem:[#allocation4 + $0x1e4] ss:$12 sps:$4 sm:$0xff]  }
  0x6f   :  { %1108 = vmatpush1.bf16.msra.mxu0 %v2527_v22  ;;  %v2575_v22 = vld [vmem:[#allocation4 + $0x2a8] ss:$12 sps:$4 sm:$0xff]  }
  0x70   :  { %1109 = vmatprep.subr.bf16.mxu0 %v2534_v23  ;;  %v2910_v23 = vsub.s32 2, %v2882_v38 }
  0x73   :  { %1110 = vmatpush1.bf16.msra.mxu0 %v2532_v24  ;;  %v2572_v24 = vld [vmem:[#allocation4 + $0x1e0] ss:$12 sps:$4 sm:$0xff]  }
  0x74   :  { %1111 = vmatprep.subr.bf16.mxu0 %v2539_v25  ;;  %v2576_v25 = vld [vmem:[#allocation4 + $0x1e8] ss:$12 sps:$4 sm:$0xff]  }
  0x77   :  { %1112 = vmatpush1.bf16.msra.mxu0 %v2537_v26  ;;  %v2579_v26 = vld [vmem:[#allocation4 + $0x1fc] ss:$12 sps:$4 sm:$0xff]  }
  0x78   :  { %1113 = vmatprep.subr.bf16.mxu0 %v2544_v27  ;;  %v2580_v27 = vld [vmem:[#allocation4 + $0x2c0] ss:$12 sps:$4 sm:$0xff]  }
  0x7b   :  { %1114 = vmatpush1.bf16.msra.mxu0 %v2542_v29  ;;  %v90_v29 = vrot.slane %v2890_v40, %v2910_v23 }
  0x7c   :  { %1115 = vmatprep.subr.bf16.mxu0 %v2549_v31  ;;  %v2581_v31 = vld [vmem:[#allocation4 + $0x200] ss:$12 sps:$4 sm:$0xff]  }
  0x7f   :  { %1116 = vmatpush1.bf16.msra.mxu0 %v2547_v33  ;;  %v2585_v33 = vld [vmem:[#allocation4 + $0x2d8] ss:$12 sps:$4 sm:$0xff]  }
  0x80   :  { %1126 = vmatprep.subr.bf16.mxu0 %v2554_v35 }
 0x109   :  { %v282_v45 = vpop.f32.mrb[0].mxu0  ;;  %v2901_v51 = vpop.f32.mrb[0].mxu1 }
 0x10a   :  { %v283_v47 = vadd.f32 %v282_v45, %v82_v43  ;;  %v284_v48 = vpop.f32.mrb[1].mxu0  ;;  %v325_v54 = vpop.f32.mrb[1].mxu1  ;;  %v324_v35 = vadd.f32 %v2901_v51, %v90_v29  ;;  %v2590_v43 = vld [vmem:[#allocation4 + $0x2f0] ss:$12 sps:$4 sm:$0xff]   ;;  %v2645_v29 = vld [vmem:[#allocation4 + $0x3d8] ss:$12 sps:$4 sm:$0xff]  }
 0x10b   :  { %v285_v49 = vadd.f32 %v284_v48, %v86_v44  ;;  %v286_v50 = vpop.f32.mrb[2].mxu0  ;;  %v326_v56 = vadd.f32 %v325_v54, %v94_v46  ;;  %v327_v57 = vpop.f32.mrb[2].mxu1  ;;  %v2587_v46 = vld [vmem:[#allocation4 + $0x228] ss:$12 sps:$4 sm:$0xff]   ;;  %v2594_v48 = vld [vmem:[#allocation4 + $0x244] ss:$12 sps:$4 sm:$0xff]  }
 0x10c   :  { %v412_v52 = vmax.f32 %v283_v47, 0.0  ;;  %v287_v53 = vpop.f32.mrb[3].mxu0  ;;  %v328_v58 = vpop.f32.mrb[3].mxu1  ;;  %v414_v45 = vmax.f32 %v324_v35, 0.0  ;;  %v2591_v47 = vld [vmem:[#allocation4 + $0x230] ss:$12 sps:$4 sm:$0xff]  }
 0x10d   :  { %v413_v55 = vmax.f32 %v285_v49, 0.0  ;;  %v415_v62 = vmax.f32 %v326_v56, 0.0  ;;  %v2597_v49 = vld [vmem:[#allocation4 + $0x304] ss:$12 sps:$4 sm:$0xff]   ;;  %v2595_v53 = vld [vmem:[#allocation4 + $0x300] ss:$12 sps:$4 sm:$0xff]  }
 0x10e   :  { %v420_v63 = vpack.c.bf16 %v412_v52, %v412_v52  ;;  %v2917_v51 = vpack.c.bf16 %v414_v45, %v414_v45  ;;  %v2592_v52 = vld [vmem:[#allocation4 + $0x240] ss:$12 sps:$4 sm:$0xff]   ;;  %v2600_v54 = vld [vmem:[#allocation4 + $0x25c] ss:$12 sps:$4 sm:$0xff]   ;;  %v2598_v57 = vld [vmem:[#allocation4 + $0x258] ss:$12 sps:$4 sm:$0xff]  }
 0x10f   :  { %v421_v59 = vpack.c.bf16 %v413_v55, %v413_v55  ;;  %v423_v2 = vpack.c.bf16 %v415_v62, %v415_v62  ;;  %v2603_v55 = vld [vmem:[#allocation4 + $0x31c] ss:$12 sps:$4 sm:$0xff]   ;;  %v2601_v58 = vld [vmem:[#allocation4 + $0x318] ss:$12 sps:$4 sm:$0xff]   ;;  %v97_v45 = vsub.s32 4, %v2882_v38 }
 0x110   :  { %v2607_v62 = vld [vmem:[#allocation4 + $0x330] ss:$12 sps:$4 sm:$0xff]   ;;  %v2657_v35 = vld [vmem:[#allocation4 + $0x40c] ss:$12 sps:$4 sm:$0xff]  }
 0x111   :  { %1117 = vmatprep.mubr.bf16.mxu0 %v421_v59  ;;  %1199 = vmatprep.mubr.bf16.mxu1 %v421_v59  ;;  %v2606_v59 = vld [vmem:[#allocation4 + $0x274] ss:$12 sps:$4 sm:$0xff]  }
 0x112   :  { %1118 = vmatmul.mubr.bf16.vlgmr.msra.gmra.mrb[8].mxu0 %v420_v63  ;;  %1200 = vmatmul.mubr.bf16.vlgmr.msra.gmra.mrb[8].mxu1 %v420_v63  ;;  %v2612_v63 = vld [vmem:[#allocation4 + $0x28c] ss:$12 sps:$4 sm:$0xff]  }
 0x113   :  { %1127 = vmatpush1.bf16.msra.mxu0 %v2552_v60  ;;  %2396 = vmatpush3.bf16.msra.mxu1 %v2556_v61  ;;  %v2609_v60 = vld [vmem:[#allocation4 + $0x334] ss:$12 sps:$4 sm:$0xff]   ;;  %v2604_v61 = vld [vmem:[#allocation4 + $0x270] ss:$12 sps:$4 sm:$0xff]  }
 0x114   :  { %1128 = vmatprep.subr.bf16.mxu0 %v2559_v0  ;;  %2397 = vmatprep.subr.bf16.mxu1 %v2560_v1  ;;  %v2615_v0 = vld [vmem:[#allocation4 + $0x34c] ss:$12 sps:$4 sm:$0xff]   ;;  %v2610_v1 = vld [vmem:[#allocation4 + $0x288] ss:$12 sps:$4 sm:$0xff]  }
 0x115   :  { %1158 = vmatprep.mubr.bf16.mxu0 %v423_v2  ;;  %1239 = vmatprep.mubr.bf16.mxu1 %v423_v2  ;;  %v2903_v7 = vpop.f32.mrb[4].mxu0  ;;  %v2613_v2 = vld [vmem:[#allocation4 + $0x348] ss:$12 sps:$4 sm:$0xff]  }
 0x116   :  { %v366_v8 = vpop.f32.mrb[5].mxu0  ;;  %v2905_v12 = vpop.f32.mrb[4].mxu1 }
 0x117   :  { %1129 = vmatpush1.bf16.msra.mxu0 %v2557_v3  ;;  %2398 = vmatpush3.bf16.msra.mxu1 %v2561_v4  ;;  %v368_v11 = vpop.f32.mrb[6].mxu0  ;;  %v2907_v16 = vpop.f32.mrb[5].mxu1  ;;  %v367_v44 = vadd.f32 %v366_v8, %v102_v34  ;;  %v2618_v3 = vld [vmem:[#allocation4 + $0x2a4] ss:$12 sps:$4 sm:$0xff]   ;;  %v2624_v8 = vld [vmem:[#allocation4 + $0x2bc] ss:$12 sps:$4 sm:$0xff]  }
 0x118   :  { %1130 = vmatprep.subr.bf16.mxu0 %v2564_v5  ;;  %2399 = vmatprep.subr.bf16.mxu1 %v2565_v6  ;;  %v369_v15 = vpop.f32.mrb[7].mxu0  ;;  %v409_v17 = vpop.f32.mrb[6].mxu1  ;;  %v2621_v4 = vld [vmem:[#allocation4 + $0x364] ss:$12 sps:$4 sm:$0xff]   ;;  %v2616_v5 = vld [vmem:[#allocation4 + $0x2a0] ss:$12 sps:$4 sm:$0xff]  }
 0x119   :  { %v410_v18 = vpop.f32.mrb[7].mxu1  ;;  %v417_v50 = vmax.f32 %v367_v44, 0.0  ;;  %v2619_v6 = vld [vmem:[#allocation4 + $0x360] ss:$12 sps:$4 sm:$0xff]   ;;  %v2625_v11 = vld [vmem:[#allocation4 + $0x378] ss:$12 sps:$4 sm:$0xff]  }
 0x11a   :  { %v2628_v15 = vld [vmem:[#allocation4 + $0x2d0] ss:$12 sps:$4 sm:$0xff]   ;;  %v2636_v18 = vld [vmem:[#allocation4 + $0x2ec] ss:$12 sps:$4 sm:$0xff]   ;;  %v2663_v44 = vld [vmem:[#allocation4 + $0x428] ss:$12 sps:$4 sm:$0xff]  }
 0x11b   :  { %1131 = vmatpush1.bf16.msra.mxu0 %v2562_v9  ;;  %2400 = vmatpush3.bf16.msra.mxu1 %v2566_v10  ;;  %v2919_v56 = vpack.c.bf16 %v417_v50, %v417_v50  ;;  %v2627_v9 = vld [vmem:[#allocation4 + $0x37c] ss:$12 sps:$4 sm:$0xff]   ;;  %v2622_v10 = vld [vmem:[#allocation4 + $0x2b8] ss:$12 sps:$4 sm:$0xff]   ;;  %v109_v50 = vsub.s32 7, %v2882_v38 }
 0x11c   :  { %1132 = vmatprep.subr.bf16.mxu0 %v2569_v13  ;;  %2401 = vmatprep.subr.bf16.mxu1 %v2570_v14  ;;  %v2630_v13 = vld [vmem:[#allocation4 + $0x2d4] ss:$12 sps:$4 sm:$0xff]   ;;  %v2631_v17 = vld [vmem:[#allocation4 + $0x390] ss:$12 sps:$4 sm:$0xff]   ;;  %v2654_v34 = vld [vmem:[#allocation4 + $0x338] ss:$12 sps:$4 sm:$0xff]  }
 0x11d   :  { %v2633_v14 = vld [vmem:[#allocation4 + $0x394] ss:$12 sps:$4 sm:$0xff]  }
 0x11f   :  { %1133 = vmatpush1.bf16.msra.mxu0 %v2567_v19  ;;  %2402 = vmatpush3.bf16.msra.mxu1 %v2571_v20  ;;  %v2639_v19 = vld [vmem:[#allocation4 + $0x3ac] ss:$12 sps:$4 sm:$0xff]   ;;  %v2634_v20 = vld [vmem:[#allocation4 + $0x2e8] ss:$12 sps:$4 sm:$0xff]  }
 0x120   :  { %1134 = vmatprep.subr.bf16.mxu0 %v2574_v21  ;;  %2403 = vmatprep.subr.bf16.mxu1 %v2575_v22  ;;  %v2637_v21 = vld [vmem:[#allocation4 + $0x3a8] ss:$12 sps:$4 sm:$0xff]   ;;  %v2642_v22 = vld [vmem:[#allocation4 + $0x3c4] ss:$12 sps:$4 sm:$0xff]  }
 0x123   :  { %1135 = vmatpush1.bf16.msra.mxu0 %v2572_v24  ;;  %2404 = vmatpush3.bf16.msra.mxu1 %v2576_v25  ;;  %v2643_v24 = vld [vmem:[#allocation4 + $0x3c8] ss:$12 sps:$4 sm:$0xff]   ;;  %v2640_v25 = vld [vmem:[#allocation4 + $0x3c0] ss:$12 sps:$4 sm:$0xff]  }
 0x124   :  { %1136 = vmatprep.subr.bf16.mxu0 %v2579_v26  ;;  %2405 = vmatprep.subr.bf16.mxu1 %v2580_v27  ;;  %v2644_v26 = vld [vmem:[#allocation4 + $0x308] ss:$12 sps:$4 sm:$0xff]  }
 0x125   :  { %v2647_v27 = vld [vmem:[#allocation4 + $0x3dc] ss:$12 sps:$4 sm:$0xff]  }
 0x127   :  { %1137 = vmatpush1.bf16.msra.mxu0 %v2577_v30  ;;  %2406 = vmatpush3.bf16.msra.mxu1 %v2581_v31  ;;  %v2649_v30 = vld [vmem:[#allocation4 + $0x320] ss:$12 sps:$4 sm:$0xff]  }
 0x128   :  { %1138 = vmatprep.subr.bf16.mxu0 %v2584_v32  ;;  %2407 = vmatprep.subr.bf16.mxu1 %v2585_v33  ;;  %v2652_v31 = vld [vmem:[#allocation4 + $0x3f4] ss:$12 sps:$4 sm:$0xff]   ;;  %v2653_v32 = vld [vmem:[#allocation4 + $0x3f8] ss:$12 sps:$4 sm:$0xff]   ;;  %v2650_v33 = vld [vmem:[#allocation4 + $0x3f0] ss:$12 sps:$4 sm:$0xff]  }
 0x12b   :  { %1139 = vmatpush1.bf16.msra.mxu0 %v2582_v36  ;;  %2408 = vmatpush3.bf16.msra.mxu1 %v2586_v37  ;;  %v2658_v36 = vld [vmem:[#allocation4 + $0x410] ss:$12 sps:$4 sm:$0xff]   ;;  %v2655_v37 = vld [vmem:[#allocation4 + $0x408] ss:$12 sps:$4 sm:$0xff]  }
 0x12c   :  { %1140 = vmatprep.subr.bf16.mxu0 %v2589_v42  ;;  %2409 = vmatprep.subr.bf16.mxu1 %v2590_v43  ;;  %v2659_v42 = vld [vmem:[#allocation4 + $0x350] ss:$12 sps:$4 sm:$0xff]  }
 0x12d   :  { %v2662_v43 = vld [vmem:[#allocation4 + $0x424] ss:$12 sps:$4 sm:$0xff]  }
 0x12f   :  { %1141 = vmatpush1.bf16.msra.mxu0 %v2587_v46  ;;  %2410 = vmatpush3.bf16.msra.mxu1 %v2591_v47  ;;  %v2660_v46 = vld [vmem:[#allocation4 + $0x420] ss:$12 sps:$4 sm:$0xff]   ;;  %v2664_v47 = vld [vmem:[#allocation4 + $0x368] ss:$12 sps:$4 sm:$0xff]  }
 0x130   :  { %1142 = vmatprep.subr.bf16.mxu0 %v2594_v48  ;;  %1907 = vmatprep.subr.bf16.mxu1 %v2597_v49  ;;  %v2667_v48 = vld [vmem:[#allocation4 + $0x43c] ss:$12 sps:$4 sm:$0xff]   ;;  %v2668_v49 = vld [vmem:[#allocation4 + $0x440] ss:$12 sps:$4 sm:$0xff]  }
 0x132   :  { %1240 = vmatmul.mubr.bf16.vlgmr.msra.gmra.mrb[12].mxu1 %v2917_v51 }
 0x133   :  { %1143 = vmatpush1.bf16.msra.mxu0 %v2592_v52  ;;  %1908 = vmatpush1.bf16.msra.mxu1 %v2595_v53  ;;  %v2665_v52 = vld [vmem:[#allocation4 + $0x438] ss:$12 sps:$4 sm:$0xff]   ;;  %v2669_v53 = vld [vmem:[#allocation4 + $0x380] ss:$12 sps:$4 sm:$0xff]  }
 0x134   :  { %1144 = vmatprep.subr.bf16.mxu0 %v2600_v54  ;;  %1909 = vmatprep.subr.bf16.mxu1 %v2603_v55  ;;  %v2672_v54 = vld [vmem:[#allocation4 + $0x454] ss:$12 sps:$4 sm:$0xff]   ;;  %v2673_v55 = vld [vmem:[#allocation4 + $0x458] ss:$12 sps:$4 sm:$0xff]  }
 0x135   :  { %1939 = vmatprep.mubr.bf16.mxu1 %v2919_v56 }
 0x137   :  { %1145 = vmatpush1.bf16.msra.mxu0 %v2598_v57  ;;  %1910 = vmatpush1.bf16.msra.mxu1 %v2601_v58  ;;  %v2670_v58 = vld [vmem:[#allocation4 + $0x450] ss:$12 sps:$4 sm:$0xff]  }
 0x138   :  { %1146 = vmatprep.subr.bf16.mxu0 %v2606_v59  ;;  %1911 = vmatprep.subr.bf16.mxu1 %v2609_v60  ;;  %v2674_v59 = vld [vmem:[#allocation4 + $0x398] ss:$12 sps:$4 sm:$0xff]  }
 0x139   :  { %v2677_v60 = vld [vmem:[#allocation4 + $0x46c] ss:$12 sps:$4 sm:$0xff]  }
 0x13b   :  { %1147 = vmatpush1.bf16.msra.mxu0 %v2604_v61  ;;  %1912 = vmatpush1.bf16.msra.mxu1 %v2607_v62  ;;  %v2678_v61 = vld [vmem:[#allocation4 + $0x470] ss:$12 sps:$4 sm:$0xff]  }
 0x13c   :  { %1148 = vmatprep.subr.bf16.mxu0 %v2612_v63  ;;  %1913 = vmatprep.subr.bf16.mxu1 %v2615_v0  ;;  %v2675_v0 = vld [vmem:[#allocation4 + $0x468] ss:$12 sps:$4 sm:$0xff]  }
 0x13f   :  { %1149 = vmatpush1.bf16.msra.mxu0 %v2610_v1  ;;  %1914 = vmatpush1.bf16.msra.mxu1 %v2613_v2  ;;  %v2679_v1 = vld [vmem:[#allocation4 + $0x3b0] ss:$12 sps:$4 sm:$0xff]  }
 0x140   :  { %1150 = vmatprep.subr.bf16.mxu0 %v2618_v3  ;;  %1915 = vmatprep.subr.bf16.mxu1 %v2621_v4  ;;  %v2682_v2 = vld [vmem:[#allocation4 + $0x484] ss:$12 sps:$4 sm:$0xff]   ;;  %v2683_v3 = vld [vmem:[#allocation4 + $0x548] ss:$12 sps:$4 sm:$0xff]  }
 0x143   :  { %1151 = vmatpush1.bf16.msra.mxu0 %v2616_v5  ;;  %1916 = vmatpush1.bf16.msra.mxu1 %v2619_v6  ;;  %v2680_v5 = vld [vmem:[#allocation4 + $0x480] ss:$12 sps:$4 sm:$0xff]   ;;  %v2684_v6 = vld [vmem:[#allocation4 + $0x488] ss:$12 sps:$4 sm:$0xff]  }
 0x144   :  { %1152 = vmatprep.subr.bf16.mxu0 %v2624_v8  ;;  %1917 = vmatprep.subr.bf16.mxu1 %v2627_v9  ;;  %v2687_v8 = vld [vmem:[#allocation4 + $0x49c] ss:$12 sps:$4 sm:$0xff]   ;;  %v2688_v9 = vld [vmem:[#allocation4 + $0x560] ss:$12 sps:$4 sm:$0xff]  }
 0x147   :  { %1153 = vmatpush1.bf16.msra.mxu0 %v2622_v10  ;;  %1918 = vmatpush1.bf16.msra.mxu1 %v2625_v11  ;;  %v2685_v10 = vld [vmem:[#allocation4 + $0x498] ss:$12 sps:$4 sm:$0xff]   ;;  %v2689_v11 = vld [vmem:[#allocation4 + $0x4a0] ss:$12 sps:$4 sm:$0xff]  }
 0x148   :  { %1154 = vmatprep.subr.bf16.mxu0 %v2630_v13  ;;  %1919 = vmatprep.subr.bf16.mxu1 %v2633_v14  ;;  %v2692_v13 = vld [vmem:[#allocation4 + $0x4b4] ss:$12 sps:$4 sm:$0xff]   ;;  %v2693_v14 = vld [vmem:[#allocation4 + $0x578] ss:$12 sps:$4 sm:$0xff]  }
 0x14b   :  { %1155 = vmatpush1.bf16.msra.mxu0 %v2628_v15  ;;  %1920 = vmatpush1.bf16.msra.mxu1 %v2631_v17  ;;  %v2690_v15 = vld [vmem:[#allocation4 + $0x4b0] ss:$12 sps:$4 sm:$0xff]   ;;  %v2694_v17 = vld [vmem:[#allocation4 + $0x4b8] ss:$12 sps:$4 sm:$0xff]  }
 0x14c   :  { %1156 = vmatprep.subr.bf16.mxu0 %v2636_v18  ;;  %1921 = vmatprep.subr.bf16.mxu1 %v2639_v19  ;;  %v2697_v18 = vld [vmem:[#allocation4 + $0x4cc] ss:$12 sps:$4 sm:$0xff]   ;;  %v2698_v19 = vld [vmem:[#allocation4 + $0x590] ss:$12 sps:$4 sm:$0xff]  }
 0x14f   :  { %1157 = vmatpush1.bf16.msra.mxu0 %v2634_v20  ;;  %1922 = vmatpush1.bf16.msra.mxu1 %v2637_v21  ;;  %v2695_v20 = vld [vmem:[#allocation4 + $0x4c8] ss:$12 sps:$4 sm:$0xff]   ;;  %v2699_v21 = vld [vmem:[#allocation4 + $0x4d0] ss:$12 sps:$4 sm:$0xff]  }
 0x150   :  { %1923 = vmatprep.subr.bf16.mxu1 %v2642_v22  ;;  %2417 = vmatprep.subr.bf16.mxu0 %v2643_v24  ;;  %v2702_v22 = vld [vmem:[#allocation4 + $0x4e4] ss:$12 sps:$4 sm:$0xff]   ;;  %v2703_v24 = vld [vmem:[#allocation4 + $0x5a8] ss:$12 sps:$4 sm:$0xff]  }
 0x152   :  { %1159 = vmatmul.mubr.bf16.vlgmr.msra.gmra.mrb[8].mxu0 %v2917_v51  ;;  %v98_v51 = vrot.slane %v2890_v40, %v97_v45  ;;  %v2722_v45 = vld [vmem:[#allocation4 + $0x544] ss:$12 sps:$4 sm:$0xff]  }
 0x153   :  { %1924 = vmatpush1.bf16.msra.mxu1 %v2640_v25  ;;  %2418 = vmatpush3.bf16.msra.mxu0 %v2644_v26  ;;  %v105_v25 = vsub.s32 6, %v2882_v38  ;;  %v2700_v26 = vld [vmem:[#allocation4 + $0x4e0] ss:$12 sps:$4 sm:$0xff]  }
 0x154   :  { %1925 = vmatprep.subr.bf16.mxu1 %v2647_v27  ;;  %2419 = vmatprep.subr.bf16.mxu0 %v2648_v28  ;;  %v365_v57 = vadd.f32 %v2903_v7, %v98_v51  ;;  %v2704_v27 = vld [vmem:[#allocation4 + $0x4e8] ss:$12 sps:$4 sm:$0xff]   ;;  %v2731_v51 = vld [vmem:[#allocation4 + $0x58c] ss:$12 sps:$4 sm:$0xff]  }
 0x155   :  { %2021 = vmatprep.mubr.bf16.mxu0 %v2919_v56  ;;  %v110_v56 = vrot.slane %v2890_v40, %v109_v50  ;;  %v2707_v28 = vld [vmem:[#allocation4 + $0x4fc] ss:$12 sps:$4 sm:$0xff]  }
 0x156   :  { %v416_v63 = vmax.f32 %v365_v57, 0.0  ;;  %v2726_v50 = vld [vmem:[#allocation4 + $0x570] ss:$12 sps:$4 sm:$0xff]   ;;  %v2740_v57 = vld [vmem:[#allocation4 + $0x5d4] ss:$12 sps:$4 sm:$0xff]  }
 0x157   :  { %1926 = vmatpush1.bf16.msra.mxu1 %v2645_v29  ;;  %2420 = vmatpush3.bf16.msra.mxu0 %v2649_v30  ;;  %v408_v62 = vadd.f32 %v2907_v16, %v110_v56  ;;  %v2708_v29 = vld [vmem:[#allocation4 + $0x5c0] ss:$12 sps:$4 sm:$0xff]   ;;  %v106_v30 = vrot.slane %v2890_v40, %v105_v25  ;;  %v2715_v40 = vld [vmem:[#allocation4 + $0x528] ss:$12 sps:$4 sm:$0xff]   ;;  %v2735_v56 = vld [vmem:[#allocation4 + $0x5b8] ss:$12 sps:$4 sm:$0xff]  }
 0x158   :  { %1927 = vmatprep.subr.bf16.mxu1 %v2652_v31  ;;  %2421 = vmatprep.subr.bf16.mxu0 %v2653_v32  ;;  %v424_v4 = vpack.c.bf16 %v416_v63, %v416_v63  ;;  %v2705_v31 = vld [vmem:[#allocation4 + $0x4f8] ss:$12 sps:$4 sm:$0xff]   ;;  %v2709_v32 = vld [vmem:[#allocation4 + $0x500] ss:$12 sps:$4 sm:$0xff]  }
 0x159   :  { %v419_v7 = vmax.f32 %v408_v62, 0.0  ;;  %v406_v38 = vadd.f32 %v2905_v12, %v106_v30  ;;  %v2720_v12 = vld [vmem:[#allocation4 + $0x540] ss:$12 sps:$4 sm:$0xff]  }
 0x15b   :  { %1928 = vmatpush1.bf16.msra.mxu1 %v2650_v33  ;;  %2422 = vmatpush3.bf16.msra.mxu0 %v2654_v34  ;;  %v427_v16 = vpack.c.bf16 %v419_v7, %v419_v7  ;;  %v2712_v33 = vld [vmem:[#allocation4 + $0x514] ss:$12 sps:$4 sm:$0xff]   ;;  %v2713_v34 = vld [vmem:[#allocation4 + $0x5d8] ss:$12 sps:$4 sm:$0xff]  }
 0x15c   :  { %1929 = vmatprep.subr.bf16.mxu1 %v2657_v35  ;;  %2423 = vmatprep.subr.bf16.mxu0 %v2658_v36  ;;  %v2710_v35 = vld [vmem:[#allocation4 + $0x510] ss:$12 sps:$4 sm:$0xff]   ;;  %v2714_v36 = vld [vmem:[#allocation4 + $0x518] ss:$12 sps:$4 sm:$0xff]  }
 0x15f   :  { %1930 = vmatpush1.bf16.msra.mxu1 %v2655_v37  ;;  %2424 = vmatpush3.bf16.msra.mxu0 %v2659_v42  ;;  %v2717_v37 = vld [vmem:[#allocation4 + $0x52c] ss:$12 sps:$4 sm:$0xff]   ;;  %v2718_v42 = vld [vmem:[#allocation4 + $0x5f0] ss:$12 sps:$4 sm:$0xff]  }
 0x160   :  { %1931 = vmatprep.subr.bf16.mxu1 %v2662_v43  ;;  %2425 = vmatprep.subr.bf16.mxu0 %v2663_v44  ;;  %v418_v43 = vmax.f32 %v406_v38, 0.0  ;;  %v2719_v44 = vld [vmem:[#allocation4 + $0x530] ss:$12 sps:$4 sm:$0xff]  }
 0x163   :  { %1932 = vmatpush1.bf16.msra.mxu1 %v2660_v46  ;;  %2426 = vmatpush3.bf16.msra.mxu0 %v2664_v47  ;;  %v426_v46 = vpack.c.bf16 %v418_v43, %v418_v43  ;;  %v2725_v47 = vld [vmem:[#allocation4 + $0x55c] ss:$12 sps:$4 sm:$0xff]  }
 0x164   :  { %1933 = vmatprep.subr.bf16.mxu1 %v2667_v48  ;;  %2427 = vmatprep.subr.bf16.mxu0 %v2668_v49  ;;  %v2723_v48 = vld [vmem:[#allocation4 + $0x558] ss:$12 sps:$4 sm:$0xff]   ;;  %v2728_v49 = vld [vmem:[#allocation4 + $0x574] ss:$12 sps:$4 sm:$0xff]  }
 0x167   :  { %1934 = vmatpush1.bf16.msra.mxu1 %v2665_v52  ;;  %2428 = vmatpush3.bf16.msra.mxu0 %v2669_v53  ;;  %v2729_v52 = vld [vmem:[#allocation4 + $0x588] ss:$12 sps:$4 sm:$0xff]   ;;  %v2734_v53 = vld [vmem:[#allocation4 + $0x5a4] ss:$12 sps:$4 sm:$0xff]  }
 0x168   :  { %1935 = vmatprep.subr.bf16.mxu1 %v2672_v54  ;;  %2429 = vmatprep.subr.bf16.mxu0 %v2673_v55  ;;  %v2732_v54 = vld [vmem:[#allocation4 + $0x5a0] ss:$12 sps:$4 sm:$0xff]   ;;  %v2737_v55 = vld [vmem:[#allocation4 + $0x5bc] ss:$12 sps:$4 sm:$0xff]  }
 0x16b   :  { %1936 = vmatpush1.bf16.msra.mxu1 %v2670_v58  ;;  %2430 = vmatpush3.bf16.msra.mxu0 %v2674_v59  ;;  %v2738_v58 = vld [vmem:[#allocation4 + $0x5d0] ss:$12 sps:$4 sm:$0xff]   ;;  %v2743_v59 = vld [vmem:[#allocation4 + $0x5ec] ss:$12 sps:$4 sm:$0xff]  }
 0x16c   :  { %1937 = vmatprep.subr.bf16.mxu1 %v2677_v60  ;;  %2431 = vmatprep.subr.bf16.mxu0 %v2678_v61  ;;  %v2741_v60 = vld [vmem:[#allocation4 + $0x5e8] ss:$12 sps:$4 sm:$0xff]  }
 0x16f   :  { %1938 = vmatpush1.bf16.msra.mxu1 %v2675_v0  ;;  %2432 = vmatpush3.bf16.msra.mxu0 %v2679_v1 }
 0x170   :  { %1948 = vmatprep.subr.bf16.mxu1 %v2682_v2  ;;  %2439 = vmatprep.subr.bf16.mxu0 %v2683_v3  ;;  %v556_v2 = vld [vmem:[%s2977_s4] sm:$0x7] }
 0x171   :  { %v569_v3 = vrot.slane %v556_v2, %v2910_v23 }
 0x172   :  { %1940 = vmatmul.mubr.bf16.vlgmr.msra.gmra.mrb[16].mxu1 %v424_v4  ;;  %2022 = vmatmul.mubr.bf16.vlgmr.msra.gmra.mrb[12].mxu0 %v424_v4 }
 0x173   :  { %1949 = vmatpush1.bf16.msra.mxu1 %v2680_v5  ;;  %2440 = vmatpush3.bf16.msra.mxu0 %v2684_v6 }
 0x174   :  { %1950 = vmatprep.subr.bf16.mxu1 %v2687_v8  ;;  %2441 = vmatprep.subr.bf16.mxu0 %v2688_v9 }
 0x175   :  { %2061 = vmatprep.mubr.bf16.mxu0 %v427_v16  ;;  %1980 = vmatprep.mubr.bf16.mxu1 %v427_v16 }
 0x177   :  { %1951 = vmatpush1.bf16.msra.mxu1 %v2685_v10  ;;  %2442 = vmatpush3.bf16.msra.mxu0 %v2689_v11  ;;  %v561_v10 = vrot.slane %v556_v2, %v2885_v39  ;;  %v565_v11 = vrot.slane %v556_v2, %v2893_v41 }
 0x178   :  { %1952 = vmatprep.subr.bf16.mxu1 %v2692_v13  ;;  %2443 = vmatprep.subr.bf16.mxu0 %v2693_v14  ;;  %v2072_v13 = vld [vmem:[%s2978_s5] ss:$2 sm:$0x7] }
 0x17b   :  { %1953 = vmatpush1.bf16.msra.mxu1 %v2690_v15  ;;  %2444 = vmatpush3.bf16.msra.mxu0 %v2694_v17  ;;  %v2077_v17 = vrot.slane %v2072_v13, %v2885_v39 }
 0x17c   :  { %1954 = vmatprep.subr.bf16.mxu1 %v2697_v18  ;;  %2445 = vmatprep.subr.bf16.mxu0 %v2698_v19 }
 0x17f   :  { %1955 = vmatpush1.bf16.msra.mxu1 %v2695_v20  ;;  %2446 = vmatpush3.bf16.msra.mxu0 %v2699_v21  ;;  %v2081_v21 = vrot.slane %v2072_v13, %v2893_v41 }
 0x180   :  { %1956 = vmatprep.subr.bf16.mxu1 %v2702_v22  ;;  %2447 = vmatprep.subr.bf16.mxu0 %v2703_v24  ;;  %v2085_v24 = vrot.slane %v2072_v13, %v2910_v23 }
 0x183   :  { %1957 = vmatpush1.bf16.msra.mxu1 %v2700_v26  ;;  %2448 = vmatpush3.bf16.msra.mxu0 %v2704_v27 }
 0x184   :  { %1958 = vmatprep.subr.bf16.mxu1 %v2707_v28  ;;  %2449 = vmatprep.subr.bf16.mxu0 %v2708_v29 }
 0x187   :  { %1959 = vmatpush1.bf16.msra.mxu1 %v2705_v31  ;;  %2450 = vmatpush3.bf16.msra.mxu0 %v2709_v32 }
 0x188   :  { %1960 = vmatprep.subr.bf16.mxu1 %v2712_v33  ;;  %2451 = vmatprep.subr.bf16.mxu0 %v2713_v34 }
 0x18b   :  { %1961 = vmatpush1.bf16.msra.mxu1 %v2710_v35  ;;  %2452 = vmatpush3.bf16.msra.mxu0 %v2714_v36 }
 0x18c   :  { %1962 = vmatprep.subr.bf16.mxu1 %v2717_v37  ;;  %2453 = vmatprep.subr.bf16.mxu0 %v2718_v42 }
 0x18f   :  { %1963 = vmatpush1.bf16.msra.mxu1 %v2715_v40  ;;  %2454 = vmatpush3.bf16.msra.mxu0 %v2719_v44  ;;  %v1378_v40 = vld [vmem:[%s2977_s4 + $0x3] sm:$0x7] }
 0x190   :  { %1964 = vmatprep.subr.bf16.mxu1 %v2722_v45  ;;  %v1391_v44 = vrot.slane %v1378_v40, %v2910_v23 }
 0x192   :  { %2062 = vmatmul.mubr.bf16.vlgmr.msra.gmra.mrb[16].mxu0 %v426_v46 }
 0x193   :  { %1965 = vmatpush1.bf16.msra.mxu1 %v2720_v12 }
 0x194   :  { %1966 = vmatprep.subr.bf16.mxu1 %v2725_v47 }
 0x197   :  { %1967 = vmatpush1.bf16.msra.mxu1 %v2723_v48 }
 0x198   :  { %1968 = vmatprep.subr.bf16.mxu1 %v2728_v49 }
 0x19b   :  { %1969 = vmatpush1.bf16.msra.mxu1 %v2726_v50 }
 0x19c   :  { %1970 = vmatprep.subr.bf16.mxu1 %v2731_v51  ;;  %v1383_v51 = vrot.slane %v1378_v40, %v2885_v39 }
 0x19f   :  { %1971 = vmatpush1.bf16.msra.mxu1 %v2729_v52  ;;  %v1387_v52 = vrot.slane %v1378_v40, %v2893_v41 }
 0x1a0   :  { %1972 = vmatprep.subr.bf16.mxu1 %v2734_v53  ;;  %v2372_v53 = vld [vmem:[%s2978_s5 + $0x1] ss:$2 sm:$0x7] }
 0x1a3   :  { %1973 = vmatpush1.bf16.msra.mxu1 %v2732_v54 }
 0x1a4   :  { %1974 = vmatprep.subr.bf16.mxu1 %v2737_v55 }
 0x1a7   :  { %1975 = vmatpush1.bf16.msra.mxu1 %v2735_v56  ;;  %v2114_v56 = vrot.slane %v2372_v53, %v2885_v39 }
 0x1a8   :  { %1976 = vmatprep.subr.bf16.mxu1 %v2740_v57 }
 0x1ab   :  { %1977 = vmatpush1.bf16.msra.mxu1 %v2738_v58 }
 0x1ac   :  { %1978 = vmatprep.subr.bf16.mxu1 %v2743_v59 }
 0x1af   :  { %1979 = vmatpush1.bf16.msra.mxu1 %v2741_v60  ;;  %v2118_v60 = vrot.slane %v2372_v53, %v2893_v41  ;;  %v2371_v41 = vld [vmem:[%s2979_s6] ss:$0 sm:$0xff] }
 0x1b2   :  { %1981 = vmatmul.mubr.bf16.vlgmr.msra.gmra.mrb[16].mxu1 %v426_v46 }
 0x1e5   :  { %v2389_v61 = vpop.f32.mrb[8].mxu1 }
 0x1e6   :  { %v2390_v62 = vpop.f32.mrb[9].mxu1 }
 0x1e7   :  { %v2391_v63 = vadd.f32 %v2390_v62, %v2389_v61  ;;  %v2392_v0 = vpop.f32.mrb[10].mxu1  ;;  %v2122_v62 = vrot.slane %v2372_v53, %v2910_v23 }
 0x1e8   :  { %v2393_v1 = vpop.f32.mrb[11].mxu1 }
 0x1e9   :  { %v1202_v5 = vadd.f32 %v2391_v63, %v569_v3 }
 0x205   :  { %v2411_v7 = vpop.f32.mrb[12].mxu1 }
 0x206   :  { %v2412_v4 = vpop.f32.mrb[13].mxu1 }
 0x207   :  { %v2413_v6 = vadd.f32 %v2412_v4, %v2411_v7  ;;  %v2414_v8 = vpop.f32.mrb[14].mxu1 }
 0x208   :  { %v2415_v9 = vpop.f32.mrb[15].mxu1 }
 0x209   :  { %v1242_v16 = vadd.f32 %v2413_v6, %v1202_v5 }
 0x20b   :  { %v1249_v19 = vmax.f32 %v1242_v16, 0.0 }
 0x20d   :  { %v2091_v30 = vmul.f32 %v2085_v24, %v1249_v19 }
 0x20f   :  { %v2096_v34 = vsel %vm2092_vm2, %v2091_v30, 0.0 }
 0x225   :  { %v1160_v14 = vpop.f32.mrb[8].mxu0 }
 0x226   :  { %v2461_v15 = vadd.f32 %v1160_v14, %v561_v10  ;;  %v1162_v18 = vpop.f32.mrb[9].mxu0 }
 0x227   :  { %v2462_v20 = vadd.f32 %v1162_v18, %v565_v11  ;;  %v1164_v22 = vpop.f32.mrb[10].mxu0 }
 0x228   :  { %v1247_v25 = vmax.f32 %v2461_v15, 0.0  ;;  %v1165_v26 = vpop.f32.mrb[11].mxu0 }
 0x229   :  { %v1248_v27 = vmax.f32 %v2462_v20, 0.0 }
 0x22a   :  { %v2089_v28 = vmul.f32 %v2077_v17, %v1247_v25 }
 0x22b   :  { %v2090_v29 = vmul.f32 %v2081_v21, %v1248_v27 }
 0x22c   :  { %v2093_v31 = vsel %vm2092_vm2, %v2089_v28, 0.0 }
 0x22d   :  { %v2094_v32 = vsel %vm2092_vm2, %v2090_v29, 0.0 }
 0x22e   :  { %v2095_v33 = vadd.f32 %v2094_v32, %v2093_v31 }
 0x230   :  { %v2097_v38 = vadd.f32 %v2096_v34, %v2095_v33 }
 0x232   :  { %2098 = vadd.xlane.f32.xlu0 %v2097_v38 }
 0x245   :  { %v2433_v35 = vpop.f32.mrb[12].mxu0 }
 0x246   :  { %v2434_v36 = vpop.f32.mrb[13].mxu0 }
 0x247   :  { %v2435_v37 = vadd.f32 %v2434_v36, %v2433_v35  ;;  %v2436_v42 = vpop.f32.mrb[14].mxu0 }
 0x248   :  { %v2437_v43 = vpop.f32.mrb[15].mxu0 }
 0x249   :  { %v2024_v12 = vadd.f32 %v2435_v37, %v1391_v44 }
 0x265   :  { %v2455_v45 = vpop.f32.mrb[16].mxu0 }
 0x266   :  { %v2456_v46 = vpop.f32.mrb[17].mxu0 }
 0x267   :  { %v2457_v47 = vadd.f32 %v2456_v46, %v2455_v45  ;;  %v2458_v48 = vpop.f32.mrb[18].mxu0 }
 0x268   :  { %v2459_v49 = vpop.f32.mrb[19].mxu0 }
 0x269   :  { %v2064_v50 = vadd.f32 %v2457_v47, %v2024_v12 }
 0x26b   :  { %v2071_v58 = vmax.f32 %v2064_v50, 0.0 }
 0x26d   :  { %v2128_v7 = vmul.f32 %v2122_v62, %v2071_v58 }
 0x26f   :  { %v2132_v39 = vsel %vm2092_vm2, %v2128_v7, 0.0 }
 0x285   :  { %v1982_v54 = vpop.f32.mrb[16].mxu1 }
 0x286   :  { %v2463_v55 = vadd.f32 %v1982_v54, %v1383_v51  ;;  %v1984_v57 = vpop.f32.mrb[17].mxu1 }
 0x287   :  { %v2464_v59 = vadd.f32 %v1984_v57, %v1387_v52  ;;  %v1986_v61 = vpop.f32.mrb[18].mxu1 }
 0x288   :  { %v2069_v63 = vmax.f32 %v2463_v55, 0.0  ;;  %v1987_v0 = vpop.f32.mrb[19].mxu1 }
 0x289   :  { %v2070_v1 = vmax.f32 %v2464_v59, 0.0 }
 0x28a   :  { %v2126_v2 = vmul.f32 %v2114_v56, %v2069_v63 }
 0x28b   :  { %v2127_v3 = vmul.f32 %v2118_v60, %v2070_v1 }
 0x28c   :  { %v2129_v4 = vsel %vm2092_vm2, %v2126_v2, 0.0 }
 0x28d   :  { %v2130_v5 = vsel %vm2092_vm2, %v2127_v3, 0.0 }
 0x28e   :  { %v2131_v6 = vadd.f32 %v2130_v5, %v2129_v4 }
 0x290   :  { %v2133_v8 = vadd.f32 %v2132_v39, %v2131_v6 }
 0x292   :  { %2134 = vadd.xlane.f32.xlu0 %v2133_v8 }
 0x2bf   :  { %v2099_v23 = vpop.xlane.xlu0 %2098 }
 0x2c0   :  { %v2107_v9 = vadd.f32 %v2371_v41, %v2099_v23 }
 0x2c2   :  { %2138 = vst.msk [vmem:[%s2980_s7] sm:$0x3] %vm2137_vm3, %v2107_v9 }
 0x31f   :  { %v2135_v16 = vpop.xlane.xlu0 %2134 }
 0x320   :  { %v2136_v10 = vadd.f32 %v2371_v41, %v2135_v16 }
 0x322   :  { %2140 = vst.msk [vmem:[%s2980_s7] sm:$0x3] %vm2139_vm4, %v2136_v10 }
 0x323   :  { %2145 = vsyncpa [#allocation3], 1 }
 0x324   :  { %2146 = vsyncpa [#allocation5], 1 }

</bundles_post_ra>
